<compile_context>
chip_gen: v7x
topology: tpu7x:2x2x1
jax: 0.10.0
libtpu: 0.0.40
codegen_flags: <defaults>
</compile_context>

<pallas_src>
import functools

import jax
import jax.numpy as jnp
from jax.experimental import pallas as pl
from jax.experimental.pallas import tpu as pltpu

# --- small, forward-consistent hyperparameters ------------------------------
BATCH = 2
SEQ = 8                      # T (<= block_size; causal mask built for actual T)
N_EMBED = 32                 # C
N_HEADS = 4
HEAD_SIZE = N_EMBED // N_HEADS
HIDDEN = 4 * N_EMBED         # 128
LN_EPS = 1e-5


def _layernorm(x, gamma, beta):
    mu = jnp.mean(x, axis=-1, keepdims=True)
    var = jnp.mean((x - mu) ** 2, axis=-1, keepdims=True)
    return (x - mu) * jax.lax.rsqrt(var + LN_EPS) * gamma + beta


def block_kernel(x_ref, wattn_ref, wffn_ref, vec_ref, out_ref, *, seq_len):
    C = N_EMBED
    T = seq_len
    x = x_ref[...].astype(jnp.float32)            # (B*T, C)
    BT = x.shape[0]

    vecs = vec_ref[...]                           # (8, HIDDEN) packed LN/bias slab
    ln1g, ln1b = vecs[0:1, :C], vecs[1:2, :C]     # (1, C) reads (broadcast-safe)
    bproj = vecs[2:3, :C]
    ln2g, ln2b = vecs[3:4, :C], vecs[4:5, :C]
    b2 = vecs[5:6, :C]
    b1 = vecs[6:7, :]                             # (1, HIDDEN)

    # ---------------- LayerNorm 1 ----------------
    xn = _layernorm(x, ln1g, ln1b)

    # ---------------- fused QKV (+proj) weight slab ----------------
    w_all = wattn_ref[...]                        # (C, 4C) = [Wq | Wk | Wv | Wproj]
    # One lane-dense (BT,C)@(C,4C) matmul gives q,k,v for all heads at once; the
    # trailing Wproj columns are computed too but ignored (free on the MXU here).
    qkv = jnp.dot(xn, w_all, preferred_element_type=jnp.float32)   # (BT, 4C)

    # Causal + same-batch mask on the flat (BT, BT) score matrix.
    row = jax.lax.broadcasted_iota(jnp.int32, (BT, BT), 0)
    col = jax.lax.broadcasted_iota(jnp.int32, (BT, BT), 1)
    if (T & (T - 1)) == 0:                        # power-of-two T: bitwise batch id
        same_batch = (row & ~(T - 1)) == (col & ~(T - 1))
    else:                                         # general fallback
        same_batch = (row // T) == (col // T)
    mask = (row >= col) & same_batch

    # NOTE: the PyTorch Head scales by C**-0.5 where C = n_embed (not head_size).
    scale = C ** -0.5
    neg_big = jnp.float32(-1e30)                  # large finite negative (no -inf)

    heads = []
    for h in range(N_HEADS):
        lo, hi = h * HEAD_SIZE, (h + 1) * HEAD_SIZE
        q = qkv[:, lo:hi]
        k = qkv[:, C + lo:C + hi]
        v = qkv[:, 2 * C + lo:2 * C + hi]
        # q @ k^T via contraction on the head dim (no explicit transpose).
        s = jax.lax.dot_general(q, k, (((1,), (1,)), ((), ())),
                                preferred_element_type=jnp.float32) * scale
        s = jnp.where(mask, s, neg_big)
        s = s - jnp.max(s, axis=-1, keepdims=True)
        p = jnp.exp(s)
        denom = jnp.sum(p, axis=-1, keepdims=True)
        p = p * pl.reciprocal(denom, approx=True)          # EUP, not VALU divide
        # (dropout on attention weights: identity in eval mode)
        heads.append(jnp.dot(p, v, preferred_element_type=jnp.float32))  # (BT, hs)

    head_cat = jnp.concatenate(heads, axis=-1)             # (BT, C)
    sa = jnp.dot(head_cat, w_all[:, 3 * C:],               # ONE output projection
                 preferred_element_type=jnp.float32) + bproj
    # (dropout after projection: identity in eval mode)
    x1 = x + sa                                            # first residual

    # ---------------- LayerNorm 2 + FeedForward ----------------
    xn2 = _layernorm(x1, ln2g, ln2b)
    w_ffn = wffn_ref[...]                                  # (2C, HIDDEN) = [W1 ; W2^T]
    w1 = w_ffn[:C, :]                                      # (C, HIDDEN)
    w2t = w_ffn[C:, :]                                     # (C, HIDDEN) = W2^T
    h1 = jnp.dot(xn2, w1, preferred_element_type=jnp.float32) + b1
    h1 = jnp.maximum(h1, 0.0)                              # ReLU
    ff = jax.lax.dot_general(h1, w2t, (((1,), (1,)), ((), ())),
                             preferred_element_type=jnp.float32) + b2
    # (dropout at FFN output: identity in eval mode)

    out_ref[...] = (x1 + ff).astype(out_ref.dtype)         # second residual


def pack_params(params):
    """Pack the 13 raw tensors into 3 lane-dense slabs for the kernel."""
    (ln1g, ln1b, wq, wk, wv, wproj, bproj, ln2g, ln2b, w1, b1, w2, b2) = params
    w_attn = jnp.concatenate([wq, wk, wv, wproj], axis=1).astype(jnp.float32)   # (C, 4C)
    w_ffn = jnp.concatenate([w1, w2.T], axis=0).astype(jnp.float32)             # (2C, 4C)
    vecs = jnp.zeros((8, HIDDEN), jnp.float32)
    vecs = vecs.at[0, :N_EMBED].set(ln1g.reshape(-1))
    vecs = vecs.at[1, :N_EMBED].set(ln1b.reshape(-1))
    vecs = vecs.at[2, :N_EMBED].set(bproj.reshape(-1))
    vecs = vecs.at[3, :N_EMBED].set(ln2g.reshape(-1))
    vecs = vecs.at[4, :N_EMBED].set(ln2b.reshape(-1))
    vecs = vecs.at[5, :N_EMBED].set(b2.reshape(-1))
    vecs = vecs.at[6, :].set(b1.reshape(-1))
    return w_attn, w_ffn, vecs


def transformer_block(x, packed):
    B, T, C = x.shape
    w_attn, w_ffn, vecs = packed
    x2d = x.reshape(B * T, C)                     # free host-side reshape
    vmem = pltpu.MemorySpace.VMEM
    out2d = pl.pallas_call(
        functools.partial(block_kernel, seq_len=T),
        out_shape=jax.ShapeDtypeStruct((B * T, C), x.dtype),
        in_specs=[pl.BlockSpec(memory_space=vmem)] * 4,   # whole arrays, one step
        out_specs=pl.BlockSpec(memory_space=vmem),
    )(x2d, w_attn, w_ffn, vecs)
    return out2d.reshape(B, T, C)


def reference_block(x, params):
    """Pure-JAX reference of Block.forward (eval mode)."""
    (ln1g, ln1b, wq, wk, wv, wproj, bproj, ln2g, ln2b, w1, b1, w2, b2) = params
    x = x.astype(jnp.float32)
    B, T, C = x.shape

    def ln(v, g, b):
        mu = jnp.mean(v, axis=-1, keepdims=True)
        var = jnp.mean((v - mu) ** 2, axis=-1, keepdims=True)
        return (v - mu) * jax.lax.rsqrt(var + LN_EPS) * g[0] + b[0]

    xn = ln(x, ln1g, ln1b)
    q = (xn @ wq).reshape(B, T, N_HEADS, HEAD_SIZE)
    k = (xn @ wk).reshape(B, T, N_HEADS, HEAD_SIZE)
    v = (xn @ wv).reshape(B, T, N_HEADS, HEAD_SIZE)
    wei = jnp.einsum("bthd,bshd->bhts", q, k) * (C ** -0.5)
    mask = jnp.tril(jnp.ones((T, T), bool))
    wei = jnp.where(mask, wei, -jnp.inf)
    wei = jax.nn.softmax(wei, axis=-1)
    out = jnp.einsum("bhts,bshd->bthd", wei, v).reshape(B, T, C)
    x1 = x + out @ wproj + bproj[0]
    xn2 = ln(x1, ln2g, ln2b)
    ff = jnp.maximum(xn2 @ w1 + b1[0], 0.0) @ w2 + b2[0]
    return x1 + ff


def init_params(key):
    ks = jax.random.split(key, 8)
    s = 0.02
    params = [
        jnp.ones((1, N_EMBED), jnp.float32),                       # ln1 gamma
        jnp.zeros((1, N_EMBED), jnp.float32),                      # ln1 beta
        s * jax.random.normal(ks[0], (N_EMBED, N_EMBED)),          # Wq (all heads)
        s * jax.random.normal(ks[1], (N_EMBED, N_EMBED)),          # Wk
        s * jax.random.normal(ks[2], (N_EMBED, N_EMBED)),          # Wv
        s * jax.random.normal(ks[3], (N_EMBED, N_EMBED)),          # Wproj
        s * jax.random.normal(ks[4], (1, N_EMBED)),                # bproj
        jnp.ones((1, N_EMBED), jnp.float32),                       # ln2 gamma
        jnp.zeros((1, N_EMBED), jnp.float32),                      # ln2 beta
        s * jax.random.normal(ks[5], (N_EMBED, HIDDEN)),           # W1
        s * jax.random.normal(ks[6], (1, HIDDEN)),                 # b1
        s * jax.random.normal(ks[7], (HIDDEN, N_EMBED)),           # W2
        jnp.zeros((1, N_EMBED), jnp.float32),                      # b2
    ]
    return [p.astype(jnp.float32) for p in params]


if __name__ == "__main__":
    key = jax.random.PRNGKey(0)
    k_x, k_p = jax.random.split(key)
    x = jax.random.normal(k_x, (BATCH, SEQ, N_EMBED), jnp.float32)
    params = init_params(k_p)
    packed = pack_params(params)

    out = transformer_block(x, packed)
    out = jax.block_until_ready(out)

    ref = reference_block(x, params)
    assert out.shape == (BATCH, SEQ, N_EMBED)
    # slightly relaxed tolerance to accommodate the approx (EUP) reciprocal
    assert jnp.allclose(out, ref, atol=1e-3, rtol=1e-3), "mismatch vs reference"

    print("KERNEL_OK")
</pallas_src>

<mosaic_0001>
module attributes {stable_mosaic.version = 11 : i64} {
  func.func @block_kernel(%arg0: memref<16x32xf32, #tpu.memory_space<vmem>>, %arg1: memref<32x128xf32, #tpu.memory_space<vmem>>, %arg2: memref<64x128xf32, #tpu.memory_space<vmem>>, %arg3: memref<8x128xf32, #tpu.memory_space<vmem>>, %arg4: memref<16x32xf32, #tpu.memory_space<vmem>>) attributes {dimension_semantics = [], scalar_prefetch = 0 : i64, scratch_operands = 0 : i64, tpu.core_type = #tpu.core_type<tc>} {
    %c0 = arith.constant 0 : index
    %c0_0 = arith.constant 0 : index
    %0 = vector.load %arg0[%c0, %c0_0] : memref<16x32xf32, #tpu.memory_space<vmem>>, vector<16x32xf32>
    %c0_1 = arith.constant 0 : index
    %c0_2 = arith.constant 0 : index
    %1 = vector.load %arg3[%c0_1, %c0_2] : memref<8x128xf32, #tpu.memory_space<vmem>>, vector<8x128xf32>
    %2 = vector.extract_strided_slice %1 {offsets = [0, 0], sizes = [1, 32], strides = [1, 1]} : vector<8x128xf32> to vector<1x32xf32>
    %3 = vector.extract_strided_slice %1 {offsets = [1, 0], sizes = [1, 32], strides = [1, 1]} : vector<8x128xf32> to vector<1x32xf32>
    %4 = vector.extract_strided_slice %1 {offsets = [2, 0], sizes = [1, 32], strides = [1, 1]} : vector<8x128xf32> to vector<1x32xf32>
    %5 = vector.extract_strided_slice %1 {offsets = [3, 0], sizes = [1, 32], strides = [1, 1]} : vector<8x128xf32> to vector<1x32xf32>
    %6 = vector.extract_strided_slice %1 {offsets = [4, 0], sizes = [1, 32], strides = [1, 1]} : vector<8x128xf32> to vector<1x32xf32>
    %7 = vector.extract_strided_slice %1 {offsets = [5, 0], sizes = [1, 32], strides = [1, 1]} : vector<8x128xf32> to vector<1x32xf32>
    %8 = vector.extract_strided_slice %1 {offsets = [6, 0], sizes = [1, 128], strides = [1, 1]} : vector<8x128xf32> to vector<1x128xf32>
    %cst = arith.constant dense<0.000000e+00> : vector<16xf32>
    %9 = vector.multi_reduction <add>, %0, %cst [1] : vector<16x32xf32> to vector<16xf32>
    %10 = vector.shape_cast %9 : vector<16xf32> to vector<16x1xf32>
    %cst_3 = arith.constant 3.200000e+01 : f32
    %11 = vector.broadcast %cst_3 : f32 to vector<16x1xf32>
    %12 = arith.divf %10, %11 : vector<16x1xf32>
    %13 = vector.broadcast %12 : vector<16x1xf32> to vector<16x32xf32>
    %14 = arith.subf %0, %13 : vector<16x32xf32>
    %15 = arith.mulf %14, %14 : vector<16x32xf32>
    %cst_4 = arith.constant dense<0.000000e+00> : vector<16xf32>
    %16 = vector.multi_reduction <add>, %15, %cst_4 [1] : vector<16x32xf32> to vector<16xf32>
    %17 = vector.shape_cast %16 : vector<16xf32> to vector<16x1xf32>
    %cst_5 = arith.constant 3.200000e+01 : f32
    %18 = vector.broadcast %cst_5 : f32 to vector<16x1xf32>
    %19 = arith.divf %17, %18 : vector<16x1xf32>
    %20 = vector.broadcast %12 : vector<16x1xf32> to vector<16x32xf32>
    %21 = arith.subf %0, %20 : vector<16x32xf32>
    %cst_6 = arith.constant 9.99999974E-6 : f32
    %22 = vector.broadcast %cst_6 : f32 to vector<16x1xf32>
    %23 = arith.addf %19, %22 : vector<16x1xf32>
    %24 = math.rsqrt %23 : vector<16x1xf32>
    %25 = vector.broadcast %24 : vector<16x1xf32> to vector<16x32xf32>
    %26 = arith.mulf %21, %25 : vector<16x32xf32>
    %27 = vector.broadcast %2 : vector<1x32xf32> to vector<16x32xf32>
    %28 = arith.mulf %26, %27 : vector<16x32xf32>
    %29 = vector.broadcast %3 : vector<1x32xf32> to vector<16x32xf32>
    %30 = arith.addf %28, %29 : vector<16x32xf32>
    %c0_7 = arith.constant 0 : index
    %c0_8 = arith.constant 0 : index
    %31 = vector.load %arg1[%c0_7, %c0_8] : memref<32x128xf32, #tpu.memory_space<vmem>>, vector<32x128xf32>
    %cst_9 = arith.constant dense<0.000000e+00> : vector<16x128xf32>
    %32 = tpu.matmul %30, %31, %cst_9 {dimension_numbers = #tpu.dot_dimension_numbers<[1], [0], [0], [1], [0, 0, 1, 1], [], []>} : vector<16x32xf32>, vector<32x128xf32>, vector<16x128xf32> -> vector<16x128xf32>
    %33 = tpu.iota {dimensions = array<i32: 0>} : vector<16x16xi32>
    %34 = tpu.iota {dimensions = array<i32: 1>} : vector<16x16xi32>
    %c-8_i32 = arith.constant -8 : i32
    %35 = vector.broadcast %c-8_i32 : i32 to vector<16x16xi32>
    %36 = arith.andi %33, %35 : vector<16x16xi32>
    %c-8_i32_10 = arith.constant -8 : i32
    %37 = vector.broadcast %c-8_i32_10 : i32 to vector<16x16xi32>
    %38 = arith.andi %34, %37 : vector<16x16xi32>
    %39 = arith.cmpi eq, %36, %38 : vector<16x16xi32>
    %40 = arith.cmpi sge, %33, %34 : vector<16x16xi32>
    %41 = arith.andi %40, %39 : vector<16x16xi1>
    %42 = vector.extract_strided_slice %32 {offsets = [0, 0], sizes = [16, 8], strides = [1, 1]} : vector<16x128xf32> to vector<16x8xf32>
    %43 = vector.extract_strided_slice %32 {offsets = [0, 32], sizes = [16, 8], strides = [1, 1]} : vector<16x128xf32> to vector<16x8xf32>
    %44 = vector.extract_strided_slice %32 {offsets = [0, 64], sizes = [16, 8], strides = [1, 1]} : vector<16x128xf32> to vector<16x8xf32>
    %cst_11 = arith.constant dense<0.000000e+00> : vector<16x16xf32>
    %45 = tpu.matmul %42, %43, %cst_11 {dimension_numbers = #tpu.dot_dimension_numbers<[1], [1], [0], [0], [0, 0, 1, 0], [], []>} : vector<16x8xf32>, vector<16x8xf32>, vector<16x16xf32> -> vector<16x16xf32>
    %cst_12 = arith.constant 0.176776692 : f32
    %46 = vector.broadcast %cst_12 : f32 to vector<16x16xf32>
    %47 = arith.mulf %45, %46 : vector<16x16xf32>
    %cst_13 = arith.constant -1.000000e+30 : f32
    %48 = vector.broadcast %cst_13 : f32 to vector<16x16xf32>
    %49 = arith.select %41, %47, %48 : vector<16x16xi1>, vector<16x16xf32>
    %cst_14 = arith.constant dense<0xFF800000> : vector<16xf32>
    %50 = vector.multi_reduction <maximumf>, %49, %cst_14 [1] : vector<16x16xf32> to vector<16xf32>
    %51 = vector.shape_cast %50 : vector<16xf32> to vector<16x1xf32>
    %52 = vector.broadcast %51 : vector<16x1xf32> to vector<16x16xf32>
    %53 = arith.subf %49, %52 : vector<16x16xf32>
    %54 = math.exp %53 : vector<16x16xf32>
    %cst_15 = arith.constant dense<0.000000e+00> : vector<16xf32>
    %55 = vector.multi_reduction <add>, %54, %cst_15 [1] : vector<16x16xf32> to vector<16xf32>
    %56 = vector.shape_cast %55 : vector<16xf32> to vector<16x1xf32>
    %57 = tpu.reciprocal %56 {approx = true} : vector<16x1xf32> -> vector<16x1xf32>
    %58 = vector.broadcast %57 : vector<16x1xf32> to vector<16x16xf32>
    %59 = arith.mulf %54, %58 : vector<16x16xf32>
    %cst_16 = arith.constant dense<0.000000e+00> : vector<16x8xf32>
    %60 = tpu.matmul %59, %44, %cst_16 {dimension_numbers = #tpu.dot_dimension_numbers<[1], [0], [0], [1], [0, 0, 1, 1], [], []>} : vector<16x16xf32>, vector<16x8xf32>, vector<16x8xf32> -> vector<16x8xf32>
    %61 = vector.extract_strided_slice %32 {offsets = [0, 8], sizes = [16, 8], strides = [1, 1]} : vector<16x128xf32> to vector<16x8xf32>
    %62 = vector.extract_strided_slice %32 {offsets = [0, 40], sizes = [16, 8], strides = [1, 1]} : vector<16x128xf32> to vector<16x8xf32>
    %63 = vector.extract_strided_slice %32 {offsets = [0, 72], sizes = [16, 8], strides = [1, 1]} : vector<16x128xf32> to vector<16x8xf32>
    %cst_17 = arith.constant dense<0.000000e+00> : vector<16x16xf32>
    %64 = tpu.matmul %61, %62, %cst_17 {dimension_numbers = #tpu.dot_dimension_numbers<[1], [1], [0], [0], [0, 0, 1, 0], [], []>} : vector<16x8xf32>, vector<16x8xf32>, vector<16x16xf32> -> vector<16x16xf32>
    %cst_18 = arith.constant 0.176776692 : f32
    %65 = vector.broadcast %cst_18 : f32 to vector<16x16xf32>
    %66 = arith.mulf %64, %65 : vector<16x16xf32>
    %cst_19 = arith.constant -1.000000e+30 : f32
    %67 = vector.broadcast %cst_19 : f32 to vector<16x16xf32>
    %68 = arith.select %41, %66, %67 : vector<16x16xi1>, vector<16x16xf32>
    %cst_20 = arith.constant dense<0xFF800000> : vector<16xf32>
    %69 = vector.multi_reduction <maximumf>, %68, %cst_20 [1] : vector<16x16xf32> to vector<16xf32>
    %70 = vector.shape_cast %69 : vector<16xf32> to vector<16x1xf32>
    %71 = vector.broadcast %70 : vector<16x1xf32> to vector<16x16xf32>
    %72 = arith.subf %68, %71 : vector<16x16xf32>
    %73 = math.exp %72 : vector<16x16xf32>
    %cst_21 = arith.constant dense<0.000000e+00> : vector<16xf32>
    %74 = vector.multi_reduction <add>, %73, %cst_21 [1] : vector<16x16xf32> to vector<16xf32>
    %75 = vector.shape_cast %74 : vector<16xf32> to vector<16x1xf32>
    %76 = tpu.reciprocal %75 {approx = true} : vector<16x1xf32> -> vector<16x1xf32>
    %77 = vector.broadcast %76 : vector<16x1xf32> to vector<16x16xf32>
    %78 = arith.mulf %73, %77 : vector<16x16xf32>
    %cst_22 = arith.constant dense<0.000000e+00> : vector<16x8xf32>
    %79 = tpu.matmul %78, %63, %cst_22 {dimension_numbers = #tpu.dot_dimension_numbers<[1], [0], [0], [1], [0, 0, 1, 1], [], []>} : vector<16x16xf32>, vector<16x8xf32>, vector<16x8xf32> -> vector<16x8xf32>
    %80 = vector.extract_strided_slice %32 {offsets = [0, 16], sizes = [16, 8], strides = [1, 1]} : vector<16x128xf32> to vector<16x8xf32>
    %81 = vector.extract_strided_slice %32 {offsets = [0, 48], sizes = [16, 8], strides = [1, 1]} : vector<16x128xf32> to vector<16x8xf32>
    %82 = vector.extract_strided_slice %32 {offsets = [0, 80], sizes = [16, 8], strides = [1, 1]} : vector<16x128xf32> to vector<16x8xf32>
    %cst_23 = arith.constant dense<0.000000e+00> : vector<16x16xf32>
    %83 = tpu.matmul %80, %81, %cst_23 {dimension_numbers = #tpu.dot_dimension_numbers<[1], [1], [0], [0], [0, 0, 1, 0], [], []>} : vector<16x8xf32>, vector<16x8xf32>, vector<16x16xf32> -> vector<16x16xf32>
    %cst_24 = arith.constant 0.176776692 : f32
    %84 = vector.broadcast %cst_24 : f32 to vector<16x16xf32>
    %85 = arith.mulf %83, %84 : vector<16x16xf32>
    %cst_25 = arith.constant -1.000000e+30 : f32
    %86 = vector.broadcast %cst_25 : f32 to vector<16x16xf32>
    %87 = arith.select %41, %85, %86 : vector<16x16xi1>, vector<16x16xf32>
    %cst_26 = arith.constant dense<0xFF800000> : vector<16xf32>
    %88 = vector.multi_reduction <maximumf>, %87, %cst_26 [1] : vector<16x16xf32> to vector<16xf32>
    %89 = vector.shape_cast %88 : vector<16xf32> to vector<16x1xf32>
    %90 = vector.broadcast %89 : vector<16x1xf32> to vector<16x16xf32>
    %91 = arith.subf %87, %90 : vector<16x16xf32>
    %92 = math.exp %91 : vector<16x16xf32>
    %cst_27 = arith.constant dense<0.000000e+00> : vector<16xf32>
    %93 = vector.multi_reduction <add>, %92, %cst_27 [1] : vector<16x16xf32> to vector<16xf32>
    %94 = vector.shape_cast %93 : vector<16xf32> to vector<16x1xf32>
    %95 = tpu.reciprocal %94 {approx = true} : vector<16x1xf32> -> vector<16x1xf32>
    %96 = vector.broadcast %95 : vector<16x1xf32> to vector<16x16xf32>
    %97 = arith.mulf %92, %96 : vector<16x16xf32>
    %cst_28 = arith.constant dense<0.000000e+00> : vector<16x8xf32>
    %98 = tpu.matmul %97, %82, %cst_28 {dimension_numbers = #tpu.dot_dimension_numbers<[1], [0], [0], [1], [0, 0, 1, 1], [], []>} : vector<16x16xf32>, vector<16x8xf32>, vector<16x8xf32> -> vector<16x8xf32>
    %99 = vector.extract_strided_slice %32 {offsets = [0, 24], sizes = [16, 8], strides = [1, 1]} : vector<16x128xf32> to vector<16x8xf32>
    %100 = vector.extract_strided_slice %32 {offsets = [0, 56], sizes = [16, 8], strides = [1, 1]} : vector<16x128xf32> to vector<16x8xf32>
    %101 = vector.extract_strided_slice %32 {offsets = [0, 88], sizes = [16, 8], strides = [1, 1]} : vector<16x128xf32> to vector<16x8xf32>
    %cst_29 = arith.constant dense<0.000000e+00> : vector<16x16xf32>
    %102 = tpu.matmul %99, %100, %cst_29 {dimension_numbers = #tpu.dot_dimension_numbers<[1], [1], [0], [0], [0, 0, 1, 0], [], []>} : vector<16x8xf32>, vector<16x8xf32>, vector<16x16xf32> -> vector<16x16xf32>
    %cst_30 = arith.constant 0.176776692 : f32
    %103 = vector.broadcast %cst_30 : f32 to vector<16x16xf32>
    %104 = arith.mulf %102, %103 : vector<16x16xf32>
    %cst_31 = arith.constant -1.000000e+30 : f32
    %105 = vector.broadcast %cst_31 : f32 to vector<16x16xf32>
    %106 = arith.select %41, %104, %105 : vector<16x16xi1>, vector<16x16xf32>
    %cst_32 = arith.constant dense<0xFF800000> : vector<16xf32>
    %107 = vector.multi_reduction <maximumf>, %106, %cst_32 [1] : vector<16x16xf32> to vector<16xf32>
    %108 = vector.shape_cast %107 : vector<16xf32> to vector<16x1xf32>
    %109 = vector.broadcast %108 : vector<16x1xf32> to vector<16x16xf32>
    %110 = arith.subf %106, %109 : vector<16x16xf32>
    %111 = math.exp %110 : vector<16x16xf32>
    %cst_33 = arith.constant dense<0.000000e+00> : vector<16xf32>
    %112 = vector.multi_reduction <add>, %111, %cst_33 [1] : vector<16x16xf32> to vector<16xf32>
    %113 = vector.shape_cast %112 : vector<16xf32> to vector<16x1xf32>
    %114 = tpu.reciprocal %113 {approx = true} : vector<16x1xf32> -> vector<16x1xf32>
    %115 = vector.broadcast %114 : vector<16x1xf32> to vector<16x16xf32>
    %116 = arith.mulf %111, %115 : vector<16x16xf32>
    %cst_34 = arith.constant dense<0.000000e+00> : vector<16x8xf32>
    %117 = tpu.matmul %116, %101, %cst_34 {dimension_numbers = #tpu.dot_dimension_numbers<[1], [0], [0], [1], [0, 0, 1, 1], [], []>} : vector<16x16xf32>, vector<16x8xf32>, vector<16x8xf32> -> vector<16x8xf32>
    %118 = tpu.concatenate %60, %79, %98, %117 in 1 : vector<16x8xf32>, vector<16x8xf32>, vector<16x8xf32>, vector<16x8xf32> -> vector<16x32xf32>
    %119 = vector.extract_strided_slice %31 {offsets = [0, 96], sizes = [32, 32], strides = [1, 1]} : vector<32x128xf32> to vector<32x32xf32>
    %cst_35 = arith.constant dense<0.000000e+00> : vector<16x32xf32>
    %120 = tpu.matmul %118, %119, %cst_35 {dimension_numbers = #tpu.dot_dimension_numbers<[1], [0], [0], [1], [0, 0, 1, 1], [], []>} : vector<16x32xf32>, vector<32x32xf32>, vector<16x32xf32> -> vector<16x32xf32>
    %121 = vector.broadcast %4 : vector<1x32xf32> to vector<16x32xf32>
    %122 = arith.addf %120, %121 : vector<16x32xf32>
    %123 = arith.addf %0, %122 : vector<16x32xf32>
    %cst_36 = arith.constant dense<0.000000e+00> : vector<16xf32>
    %124 = vector.multi_reduction <add>, %123, %cst_36 [1] : vector<16x32xf32> to vector<16xf32>
    %125 = vector.shape_cast %124 : vector<16xf32> to vector<16x1xf32>
    %cst_37 = arith.constant 3.200000e+01 : f32
    %126 = vector.broadcast %cst_37 : f32 to vector<16x1xf32>
    %127 = arith.divf %125, %126 : vector<16x1xf32>
    %128 = vector.broadcast %127 : vector<16x1xf32> to vector<16x32xf32>
    %129 = arith.subf %123, %128 : vector<16x32xf32>
    %130 = arith.mulf %129, %129 : vector<16x32xf32>
    %cst_38 = arith.constant dense<0.000000e+00> : vector<16xf32>
    %131 = vector.multi_reduction <add>, %130, %cst_38 [1] : vector<16x32xf32> to vector<16xf32>
    %132 = vector.shape_cast %131 : vector<16xf32> to vector<16x1xf32>
    %cst_39 = arith.constant 3.200000e+01 : f32
    %133 = vector.broadcast %cst_39 : f32 to vector<16x1xf32>
    %134 = arith.divf %132, %133 : vector<16x1xf32>
    %135 = vector.broadcast %127 : vector<16x1xf32> to vector<16x32xf32>
    %136 = arith.subf %123, %135 : vector<16x32xf32>
    %cst_40 = arith.constant 9.99999974E-6 : f32
    %137 = vector.broadcast %cst_40 : f32 to vector<16x1xf32>
    %138 = arith.addf %134, %137 : vector<16x1xf32>
    %139 = math.rsqrt %138 : vector<16x1xf32>
    %140 = vector.broadcast %139 : vector<16x1xf32> to vector<16x32xf32>
    %141 = arith.mulf %136, %140 : vector<16x32xf32>
    %142 = vector.broadcast %5 : vector<1x32xf32> to vector<16x32xf32>
    %143 = arith.mulf %141, %142 : vector<16x32xf32>
    %144 = vector.broadcast %6 : vector<1x32xf32> to vector<16x32xf32>
    %145 = arith.addf %143, %144 : vector<16x32xf32>
    %c0_41 = arith.constant 0 : index
    %c0_42 = arith.constant 0 : index
    %146 = vector.load %arg2[%c0_41, %c0_42] : memref<64x128xf32, #tpu.memory_space<vmem>>, vector<64x128xf32>
    %147 = vector.extract_strided_slice %146 {offsets = [0, 0], sizes = [32, 128], strides = [1, 1]} : vector<64x128xf32> to vector<32x128xf32>
    %148 = vector.extract_strided_slice %146 {offsets = [32, 0], sizes = [32, 128], strides = [1, 1]} : vector<64x128xf32> to vector<32x128xf32>
    %cst_43 = arith.constant dense<0.000000e+00> : vector<16x128xf32>
    %149 = tpu.matmul %145, %147, %cst_43 {dimension_numbers = #tpu.dot_dimension_numbers<[1], [0], [0], [1], [0, 0, 1, 1], [], []>} : vector<16x32xf32>, vector<32x128xf32>, vector<16x128xf32> -> vector<16x128xf32>
    %150 = vector.broadcast %8 : vector<1x128xf32> to vector<16x128xf32>
    %151 = arith.addf %149, %150 : vector<16x128xf32>
    %cst_44 = arith.constant 0.000000e+00 : f32
    %152 = vector.broadcast %cst_44 : f32 to vector<16x128xf32>
    %153 = arith.maximumf %151, %152 : vector<16x128xf32>
    %cst_45 = arith.constant dense<0.000000e+00> : vector<16x32xf32>
    %154 = tpu.matmul %153, %148, %cst_45 {dimension_numbers = #tpu.dot_dimension_numbers<[1], [1], [0], [0], [0, 0, 1, 0], [], []>} : vector<16x128xf32>, vector<32x128xf32>, vector<16x32xf32> -> vector<16x32xf32>
    %155 = vector.broadcast %7 : vector<1x32xf32> to vector<16x32xf32>
    %156 = arith.addf %154, %155 : vector<16x32xf32>
    %157 = arith.addf %123, %156 : vector<16x32xf32>
    %c0_46 = arith.constant 0 : index
    %c0_47 = arith.constant 0 : index
    %158 = vector.load %arg4[%c0_46, %c0_47] : memref<16x32xf32, #tpu.memory_space<vmem>>, vector<16x32xf32>
    tpu.vector_store %arg4[%c0_46, %c0_47], %157 {strides = array<i32>} : memref<16x32xf32, #tpu.memory_space<vmem>>, vector<16x32xf32>,
    return
  }
}

</mosaic_0001>

<bundles_post_ra>
// kernel: tpu_custom_call.1
= control target key start
LH: loop header
LB: loop body
LE: loop exit
PB: predicated region body
PF: predicated region fallthrough
CT: control target
= control target key end

     0   :  { %9 = vsyncpa [#allocation3], 0  ;;  %s2158_s0 = inlined_call_operand.hbm [shape: f32[16,32], index: 0, kind: input, shape index: {}]   ;;  %s2159_s1 = inlined_call_operand.hbm [shape: f32[32,128], index: 1, kind: input, shape index: {}]   ;;  %s2160_s2 = inlined_call_operand.hbm [shape: f32[64,128], index: 2, kind: input, shape index: {}]   ;;  %s2161_s3 = inlined_call_operand.vmem [shape: f32[8,128], index: 3, kind: input, shape index: {}]   ;;  %s2162_s4 = inlined_call_operand.hbm [shape: f32[16,32], index: 4, kind: output, shape index: {}]  }
   0x1   :  { %10 = vsyncpa [#allocation6], 0 }
   0x2   :  { %11 = vsyncpa [#allocation4], 0  ;;  %s1847_s15 = smov [#allocation5]   ;;  %s1848_s17 = smov [#allocation2]  }
   0x3   :  { %s29_s16 = sshll.u32 %s1847_s15, 4  ;;  %s17_s18 = sshll.u32 %s1848_s17, 4  ;;  %s30_s16 = int_to_ptr.vmem [resolvable:$true] %s29_s16  ;;  %s1892_s18 = int_to_ptr.vmem [resolvable:$true] %s17_s18 }
   0x4   :  { %s1753_s21 = scalar_lea.hbm %s2159_s1, 512 }
   0x5   :  { %p1754_p0 = scmp.ne.s32.totalorder %s2159_s1, %s1753_s21  ;;  %p1757_p1 = scmp.lt.u32.totalorder %s1753_s21, %s2159_s1 }
   0x7   :  { %p1759_p2 = pnand %p1757_p1, %p1754_p0 }
   0x9   :  { %1762 = shalt.err (!%p1759_p2)
}
   0xa   :  { %s1763_s26 = scalar_lea.vmem %s30_s16, 512  ;;  %p1768_p4 = scmp.lt.s32.totalorder %s30_s16, %s30_s16 }
   0xb   :  { %p1764_p3 = scmp.ne.s32.totalorder %s30_s16, %s1763_s26  ;;  %p1769_p5 = scmp.lt.s32.totalorder %s1763_s26, %s1763_s26 }
   0xd   :  { %p1770_p6 = por %p1769_p5, %p1768_p4 }
   0xf   :  { %p1771_p7 = pnand %p1770_p6, %p1764_p3 }
  0x11   :  { %1774 = shalt.err (!%p1771_p7)
}
  0x12   :  { %s1849_s27 = smov 128   ;;  %s1850_s28 = smov 8  }
  0x13   :  { %35 = dma.hbm_to_vmem [thread:$0]  %s2159_s1, 512, %s30_s16, [#allocation6], %s1849_s27, %s1849_s27, %s1850_s28  }
  0x14   :  { %s1775_s7 = scalar_lea.hbm %s2158_s0, 256 }
  0x15   :  { %p1776_p8 = scmp.ne.s32.totalorder %s2158_s0, %s1775_s7  ;;  %p1779_p9 = scmp.lt.u32.totalorder %s1775_s7, %s2158_s0 }
  0x17   :  { %p1781_p10 = pnand %p1779_p9, %p1776_p8 }
  0x19   :  { %1784 = shalt.err (!%p1781_p10)
}
  0x1a   :  { %s1785_s12 = scalar_lea.vmem %s1892_s18, 256  ;;  %p1790_p12 = scmp.lt.s32.totalorder %s1892_s18, %s1892_s18 }
  0x1b   :  { %p1786_p11 = scmp.ne.s32.totalorder %s1892_s18, %s1785_s12  ;;  %p1791_p13 = scmp.lt.s32.totalorder %s1785_s12, %s1785_s12 }
  0x1d   :  { %p1792_p0 = por %p1791_p13, %p1790_p12 }
  0x1f   :  { %p1793_p1 = pnand %p1792_p0, %p1786_p11 }
  0x21   :  { %1796 = shalt.err (!%p1793_p1)
}
  0x22   :  { %23 = dma.hbm_to_vmem [thread:$0]  %s2158_s0, 256, %s1892_s18, [#allocation3], %s1849_s27, %s1849_s27, %s1850_s28  }
  0x23   :  { %s1851_s14 = smov [#allocation7]   ;;  %s1797_s19 = scalar_lea.hbm %s2160_s2, 1024 }
  0x24   :  { %s41_s15 = sshll.u32 %s1851_s14, 4  ;;  %p1798_p2 = scmp.ne.s32.totalorder %s2160_s2, %s1797_s19  ;;  %s42_s15 = int_to_ptr.vmem [resolvable:$true] %s41_s15 }
  0x25   :  { %p1801_p3 = scmp.lt.u32.totalorder %s1797_s19, %s2160_s2 }
  0x27   :  { %p1803_p4 = pnand %p1801_p3, %p1798_p2 }
  0x29   :  { %1806 = shalt.err (!%p1803_p4)
}
  0x2a   :  { %s1807_s24 = scalar_lea.vmem %s42_s15, 1024  ;;  %p1812_p6 = scmp.lt.s32.totalorder %s42_s15, %s42_s15 }
  0x2b   :  { %p1808_p5 = scmp.ne.s32.totalorder %s42_s15, %s1807_s24  ;;  %p1813_p7 = scmp.lt.s32.totalorder %s1807_s24, %s1807_s24 }
  0x2d   :  { %p1814_p8 = por %p1813_p7, %p1812_p6 }
  0x2f   :  { %p1815_p9 = pnand %p1814_p8, %p1808_p5 }
  0x31   :  { %1818 = shalt.err (!%p1815_p9)
}
  0x32   :  { %47 = dma.hbm_to_vmem [thread:$0]  %s2160_s2, 1024, %s42_s15, [#allocation6], %s1849_s27, %s1849_s27, %s1850_s28  }
  0x33   :  { %1841 = dma.done.wait [#allocation3], 256  }
  0x34   :  { %1842 = vsyncadd [#allocation3], 4294967040 }
  0x35   :  { %1843 = dma.done.wait [#allocation6], 1536  }
  0x36   :  { %1844 = vsyncadd [#allocation6], 4294965760  ;;  %vm62_vm0 = vcmask 261120   ;;  %v1944_v0 = vld [vmem:[#allocation2] sm:$0xff]  ;;  %v1946_v1 = vld [vmem:[#allocation2 + $0x8] sm:$0xff]  ;;  %v90_v23 = vlaneseq  ;;  %vm207_vm1 = vcmask 64512  }
  0x37   :  { %v63_v2 = vsel %vm62_vm0, %v1944_v0, 0.0  ;;  %v66_v3 = vsel %vm62_vm0, %v1946_v1, 0.0  ;;  %v1956_v14 = vld [vmem:[#allocation5] sm:$0xff]  ;;  %v1958_v15 = vld [vmem:[#allocation5 + $0x8] sm:$0xff]  ;;  %v1960_v16 = vld [vmem:[#allocation5 + $0x10] sm:$0xff]  ;;  %s1853_s26 = smov 96  }
  0x38   :  { %64 = vadd.xlane.f32.xlu0 %v63_v2  ;;  %v1703_v17 = vpack.i.bf16 %v1958_v15, %v1956_v14  ;;  %v1571_v18 = vpack.c.bf16 %v1958_v15, %v1956_v14  ;;  %v1966_v19 = vld [vmem:[#allocation5 + $0x18] sm:$0xff]  ;;  %v1970_v27 = vshrl.u32 %v90_v23, 7  ;;  %v1976_v30 = vld [vmem:[%s2161_s3] sm:$0xff]  ;;  %s1852_s3 = smov 88   ;;  %s1854_s29 = smov 120   ;;  %vm1999_vm2 = vmpackc.low %vm207_vm1, %vm207_vm1  ;;  %v191_v57 = vand.u32 127, %v90_v23 }
  0x39   :  { %v1575_v20 = vpack.c.bf16 %v1966_v19, %v1960_v16  ;;  %vm295_vm8 = vcmask 130048   ;;  %s1855_s30 = smov 56   ;;  %s1856_s5 = smov 64   ;;  %vm1045_vm10 = vcmask 195584  }
  0x3a   :  { %1572 = vmatprep.subr.bf16.mxu1 %v1571_v18  ;;  %v92_v29 = vsub.s32 0, %v1970_v27  ;;  %v98_v31 = vsub.s32 1, %v1970_v27  ;;  %v189_v56 = vadd.s32 8, %v1970_v27  ;;  %v194_v59 = vand.u32 4294967288, %v191_v57  ;;  %s1857_s6 = smov 80   ;;  %s1858_s7 = smov 112  }
  0x3b   :  { %1574 = vmatpush3.bf16.msra.mxu1 %v1571_v18  ;;  %v192_v60 = vand.u32 4294967288, %v1970_v27  ;;  %vm197_vm6 = vcmp.ge.s32.totalorder %v1970_v27, %v191_v57  ;;  %s1859_s8 = smov 48   ;;  %s1860_s9 = smov 104  }
  0x3c   :  { %67 = vadd.xlane.f32.xlu0 %v66_v3  ;;  %1576 = vmatprep.subr.bf16.mxu1 %v1575_v20  ;;  %v93_v32 = vrot.slane %v1976_v30, %v92_v29  ;;  %v99_v35 = vrot.slane %v1976_v30, %v98_v31  ;;  %v193_v58 = vand.u32 4294967288, %v189_v56  ;;  %vm198_vm4 = vcmp.ge.s32.totalorder %v189_v56, %v191_v57  ;;  %s1861_s10 = smov 72   ;;  %s1862_s11 = smov 40  }
  0x3d   :  { %vm195_vm5 = vcmp.eq.s32.totalorder %v192_v60, %v194_v59  ;;  %s1863_s12 = smov 32   ;;  %s1864_s1 = smov 16  }
  0x3e   :  { %vm196_vm3 = vcmp.eq.s32.totalorder %v193_v58, %v194_v59  ;;  %vm2022_vm9 = vmand %vm197_vm6, %vm195_vm5  ;;  %s1865_s13 = smov 24   ;;  %s1866_s14 = smov [#allocation8]  }
  0x3f   :  { %1578 = vmatpush3.bf16.msra.mxu1 %v1575_v20  ;;  %vm2018_vm7 = vmand %vm198_vm4, %vm196_vm3  ;;  %s1372_s15 = sshll.u32 %s1866_s14, 4  ;;  %s1373_s15 = int_to_ptr.vmem [resolvable:$true] %s1372_s15 }
  0x40   :  { %s1819_s16 = scalar_lea.vmem %s1373_s15, 256  ;;  %p1824_p11 = scmp.lt.s32.totalorder %s1373_s15, %s1373_s15 }
  0x41   :  { %p1820_p10 = scmp.ne.s32.totalorder %s1373_s15, %s1819_s16  ;;  %p1825_p12 = scmp.lt.s32.totalorder %s1819_s16, %s1819_s16 }
  0x43   :  { %p1826_p13 = por %p1825_p12, %p1824_p11 }
  0x45   :  { %p1827_p0 = pnand %p1826_p13, %p1820_p10 }
  0xc5   :  { %v65_v4 = vpop.xlane.xlu0 %64 }
  0xc6   :  { %v70_v5 = vmul.f32 0.03125, %v65_v4 }
  0xc8   :  { %v72_v6 = vsub.f32 %v1944_v0, %v70_v5 }
  0xc9   :  { %v68_v7 = vpop.xlane.xlu0 %67 }
  0xca   :  { %v71_v8 = vmul.f32 0.03125, %v68_v7  ;;  %v74_v9 = vmul.f32 %v72_v6, %v72_v6 }
  0xcc   :  { %v73_v10 = vsub.f32 %v1946_v1, %v71_v8  ;;  %v76_v11 = vsel %vm62_vm0, %v74_v9, 0.0 }
  0xcd   :  { %77 = vadd.xlane.f32.xlu1 %v76_v11 }
  0xce   :  { %v75_v12 = vmul.f32 %v73_v10, %v73_v10 }
  0xd0   :  { %v79_v13 = vsel %vm62_vm0, %v75_v12, 0.0 }
  0xd1   :  { %80 = vadd.xlane.f32.xlu1 %v79_v13 }
 0x15a   :  { %v78_v21 = vpop.xlane.xlu1 %77 }
 0x15b   :  { %v82_v22 = vmul.f32 0.03125, %v78_v21 }
 0x15d   :  { %v84_v24 = vadd.f32 1e-05, %v82_v22 }
 0x15e   :  { %v81_v25 = vpop.xlane.xlu1 %80 }
 0x15f   :  { %1713 = vrsqrt.f32 %v84_v24  ;;  %v83_v26 = vmul.f32 0.03125, %v81_v25 }
 0x161   :  { %v85_v28 = vadd.f32 1e-05, %v83_v26 }
 0x163   :  { %1715 = vrsqrt.f32 %v85_v28 }
 0x169   :  { %v1714_v33 = vpop.eup %1713 }
 0x16a   :  { %v88_v34 = vmul.f32 %v1714_v33, %v72_v6 }
 0x16c   :  { %v94_v36 = vmul.f32 %v93_v32, %v88_v34 }
 0x16d   :  { %v1716_v37 = vpop.eup %1715 }
 0x16e   :  { %v89_v38 = vmul.f32 %v1716_v37, %v73_v10  ;;  %v100_v39 = vadd.f32 %v99_v35, %v94_v36 }
 0x170   :  { %v95_v40 = vmul.f32 %v93_v32, %v89_v38  ;;  %1479 = vmatprep.mubr.msk.f32.mxu1 %vm62_vm0, %v100_v39 }
 0x172   :  { %v101_v41 = vadd.f32 %v99_v35, %v95_v40 }
 0x174   :  { %1480 = vmatmul.mubr.msk.f32.vlgmr.msra.gmra.mrb[0].mxu1 %vm62_vm0, %v101_v41 }
 0x247   :  { %v1983_v42 = vpop.f32.mrb[0].mxu1 }
 0x248   :  { %v1985_v43 = vpop.f32.mrb[1].mxu1 }
 0x249   :  { %1486 = vmatprep.mubr.msk.f32.mxu1 %vm207_vm1, %v1985_v43  ;;  %v1991_v44 = vpack.i.bf16 %v1983_v42, %v1985_v43 }
 0x24b   :  { %1669 = vrot.lane.b32.xlu1 %v1991_v44, %s1852_s3  ;;  %1664 = vrot.lane.b32.xlu0 %v1991_v44, %s1853_s26 }
 0x24f   :  { %405 = vrot.lane.b32.xlu1 %v1985_v43, %s1854_s29 }
 0x253   :  { %407 = vrot.lane.b32.xlu1 %v1983_v42, %s1854_s29 }
 0x2bd   :  { %v1670_v45 = vpop.permute.xlu1 %1669  ;;  %v1665_v46 = vpop.permute.xlu0 %1664 }
 0x2be   :  { %v1672_v47 = vunpack.i.h.bf16 %v1670_v45  ;;  %v1671_v48 = vunpack.i.l.bf16 %v1670_v45  ;;  %v1667_v49 = vunpack.i.h.bf16 %v1665_v46  ;;  %v1666_v50 = vunpack.i.l.bf16 %v1665_v46 }
 0x2c0   :  { %v1579_v52 = vpack.c.bf16 %v1667_v49, %v1666_v50  ;;  %v1589_v53 = vpack.c.bf16 %v1672_v47, %v1671_v48 }
 0x2c1   :  { %v406_v54 = vpop.permute.xlu1 %405 }
 0x2c2   :  { %1581 = vmatprep.subr.msk.bf16.mxu1 %vm1999_vm2, %v1579_v52 }
 0x2c3   :  { %1584 = vmatpush3.bf16.xpose.msk.msra.mxu1 %vm1999_vm2, %v1579_v52 }
 0x2c4   :  { %1591 = vmatprep.subr.msk.bf16.mxu1 %vm1999_vm2, %v1589_v53 }
 0x2c5   :  { %v408_v55 = vpop.permute.xlu1 %407 }
 0x2ca   :  { %1487 = vmatmul.mubr.msk.f32.vlgmr.msra.gmra.mrb[2].mxu1 %vm207_vm1, %v1983_v42 }
 0x2cb   :  { %1594 = vmatpush3.bf16.xpose.msk.msra.mxu1 %vm1999_vm2, %v1589_v53  ;;  %1500 = vmatprep.mubr.msk.f32.mxu1 %vm207_vm1, %v406_v54 }
 0x2d2   :  { %1501 = vmatmul.mubr.msk.f32.vlgmr.msra.gmra.mrb[4].mxu1 %vm207_vm1, %v408_v55 }
 0x39d   :  { %v1488_v61 = vpop.f32.mrb[2].mxu1 }
 0x39e   :  { %v292_v63 = vmul.f32 0.17677669, %v1488_v61  ;;  %v282_v2 = vpop.f32.mrb[3].mxu1 }
 0x39f   :  { %v291_v4 = vmul.f32 0.17677669, %v282_v2 }
 0x3a0   :  { %v294_v5 = vsel %vm2018_vm7, %v292_v63, -1e+30 }
 0x3a1   :  { %v299_v6 = vsel %vm295_vm8, %v294_v5, -inf  ;;  %v293_v7 = vsel %vm2022_vm9, %v291_v4, -1e+30 }
 0x3a2   :  { %300 = vmax.xlane.f32.xlu1 %v299_v6  ;;  %v296_v8 = vsel %vm295_vm8, %v293_v7, -inf }
 0x3a3   :  { %297 = vmax.xlane.f32.xlu0 %v296_v8 }
 0x3a5   :  { %v1502_v9 = vpop.f32.mrb[4].mxu1 }
 0x3a6   :  { %v487_v10 = vpop.f32.mrb[5].mxu1  ;;  %v497_v11 = vmul.f32 0.17677669, %v1502_v9 }
 0x3a7   :  { %v496_v12 = vmul.f32 0.17677669, %v487_v10 }
 0x3a8   :  { %v499_v20 = vsel %vm2018_vm7, %v497_v11, -1e+30 }
 0x3a9   :  { %v498_v13 = vsel %vm2022_vm9, %v496_v12, -1e+30  ;;  %v503_v21 = vsel %vm295_vm8, %v499_v20, -inf }
 0x3aa   :  { %v500_v18 = vsel %vm295_vm8, %v498_v13, -inf }
 0x3ab   :  { %501 = vmax.xlane.f32.xlu0 %v500_v18 }
 0x3af   :  { %504 = vmax.xlane.f32.xlu0 %v503_v21 }
 0x42f   :  { %v301_v22 = vpop.xlane.xlu1 %300 }
 0x430   :  { %v303_v23 = vsub.f32 %v294_v5, %v301_v22  ;;  %v298_v24 = vpop.xlane.xlu0 %297 }
 0x431   :  { %v302_v25 = vsub.f32 %v293_v7, %v298_v24 }
 0x432   :  { %v306_v26 = vmul.f32 1.442695, %v303_v23 }
 0x433   :  { %v304_v28 = vmul.f32 1.442695, %v302_v25 }
 0x434   :  { %1717 = vpow2.f32 %v306_v26 }
 0x435   :  { %1719 = vpow2.f32 %v304_v28 }
 0x438   :  { %v502_v29 = vpop.xlane.xlu0 %501 }
 0x439   :  { %v506_v31 = vsub.f32 %v498_v13, %v502_v29 }
 0x43b   :  { %v508_v32 = vmul.f32 1.442695, %v506_v31 }
 0x43c   :  { %v505_v33 = vpop.xlane.xlu0 %504 }
 0x43d   :  { %1721 = vpow2.f32 %v508_v32  ;;  %v507_v34 = vsub.f32 %v499_v20, %v505_v33 }
 0x43e   :  { %v1718_v35 = vpop.eup %1717 }
 0x43f   :  { %v1720_v36 = vpop.eup %1719  ;;  %v510_v37 = vmul.f32 1.442695, %v507_v34  ;;  %v311_v38 = vsel %vm295_vm8, %v1718_v35, 0.0 }
 0x440   :  { %312 = vadd.xlane.f32.xlu1 %v311_v38  ;;  %v308_v39 = vsel %vm295_vm8, %v1720_v36, 0.0 }
 0x441   :  { %1723 = vpow2.f32 %v510_v37  ;;  %309 = vadd.xlane.f32.xlu0 %v308_v39 }
 0x447   :  { %v1722_v40 = vpop.eup %1721 }
 0x448   :  { %v512_v41 = vsel %vm295_vm8, %v1722_v40, 0.0 }
 0x449   :  { %513 = vadd.xlane.f32.xlu0 %v512_v41 }
 0x44b   :  { %v1724_v45 = vpop.eup %1723 }
 0x44c   :  { %v515_v46 = vsel %vm295_vm8, %v1724_v45, 0.0 }
 0x44d   :  { %516 = vadd.xlane.f32.xlu1 %v515_v46 }
 0x45e   :  { %1679 = vrot.lane.b32.xlu1 %v1991_v44, %s1855_s30 }
 0x45f   :  { %1674 = vrot.lane.b32.xlu0 %v1991_v44, %s1856_s5 }
 0x462   :  { %1684 = vrot.lane.b32.xlu1 %v1991_v44, %s1857_s6 }
 0x463   :  { %611 = vrot.lane.b32.xlu0 %v1983_v42, %s1858_s7 }
 0x466   :  { %609 = vrot.lane.b32.xlu1 %v1985_v43, %s1858_s7 }
 0x4cd   :  { %v313_v48 = vpop.xlane.xlu1 %312 }
 0x4ce   :  { %v310_v47 = vpop.xlane.xlu0 %309 }
 0x4cf   :  { %1725 = vrcp.f32 %v310_v47 }
 0x4d0   :  { %1727 = vrcp.f32 %v313_v48 }
 0x4d6   :  { %v514_v49 = vpop.xlane.xlu0 %513 }
 0x4d7   :  { %1729 = vrcp.f32 %v514_v49 }
 0x4d9   :  { %v1726_v50 = vpop.eup %1725 }
 0x4da   :  { %v517_v52 = vpop.xlane.xlu1 %516  ;;  %v1675_v53 = vpop.permute.xlu0 %1674  ;;  %v316_v54 = vmul.f32 %v1726_v50, %v1720_v36 }
 0x4db   :  { %1731 = vrcp.f32 %v517_v52  ;;  %v1677_v55 = vunpack.i.h.bf16 %v1675_v53  ;;  %v1676_v56 = vunpack.i.l.bf16 %v1675_v53  ;;  %v1728_v58 = vpop.eup %1727 }
 0x4dc   :  { %1493 = vmatprep.mubr.msk.f32.mxu0 %vm295_vm8, %v316_v54  ;;  %v317_v4 = vmul.f32 %v1728_v58, %v1718_v35 }
 0x4dd   :  { %v1585_v57 = vpack.c.bf16 %v1677_v55, %v1676_v56 }
 0x4de   :  { %v1680_v59 = vpop.permute.xlu1 %1679  ;;  %v612_v13 = vpop.permute.xlu0 %611 }
 0x4df   :  { %v1682_v60 = vunpack.i.h.bf16 %v1680_v59  ;;  %v1681_v61 = vunpack.i.l.bf16 %v1680_v59  ;;  %1586 = vmatprep.subr.bf16.mxu0 %v1585_v57 }
 0x4e0   :  { %1588 = vmatpush3.bf16.msra.mxu0 %v1585_v57 }
 0x4e1   :  { %v1730_v63 = vpop.eup %1729  ;;  %v1595_v2 = vpack.c.bf16 %v1682_v60, %v1681_v61 }
 0x4e2   :  { %v1685_v5 = vpop.permute.xlu1 %1684  ;;  %v520_v6 = vmul.f32 %v1730_v63, %v1722_v40 }
 0x4e3   :  { %v1687_v7 = vunpack.i.h.bf16 %v1685_v5  ;;  %v1686_v8 = vunpack.i.l.bf16 %v1685_v5  ;;  %1494 = vmatmul.mubr.msk.f32.vlgmr.msra.gmra.mrb[0].mxu0 %vm295_vm8, %v317_v4  ;;  %1596 = vmatprep.subr.bf16.mxu0 %v1595_v2 }
 0x4e4   :  { %1598 = vmatpush3.bf16.msra.mxu0 %v1595_v2  ;;  %1507 = vmatprep.mubr.msk.f32.mxu0 %vm295_vm8, %v520_v6 }
 0x4e5   :  { %v1732_v9 = vpop.eup %1731  ;;  %v1599_v10 = vpack.c.bf16 %v1687_v7, %v1686_v8 }
 0x4e6   :  { %v521_v11 = vmul.f32 %v1732_v9, %v1724_v45  ;;  %v610_v12 = vpop.permute.xlu1 %609 }
 0x4e7   :  { %1601 = vmatprep.subr.msk.bf16.mxu0 %vm1999_vm2, %v1599_v10 }
 0x4e8   :  { %1508 = vmatmul.mubr.msk.f32.vlgmr.msra.gmra.mrb[2].mxu0 %vm295_vm8, %v521_v11 }
 0x4e9   :  { %1514 = vmatprep.mubr.msk.f32.mxu0 %vm207_vm1, %v610_v12 }
 0x4ed   :  { %1604 = vmatpush3.bf16.xpose.msk.msra.mxu0 %vm1999_vm2, %v1599_v10  ;;  %v1708_v10 = vpack.i.bf16 %v1966_v19, %v1960_v16 }
 0x4f4   :  { %1515 = vmatmul.mubr.msk.f32.vlgmr.msra.gmra.mrb[4].mxu0 %vm207_vm1, %v612_v13 }
 0x5b6   :  { %v2057_v18 = vpop.f32.mrb[0].mxu0 }
 0x5b7   :  { %v2059_v20 = vpop.f32.mrb[1].mxu0 }
 0x5bb   :  { %v2061_v21 = vpop.f32.mrb[2].mxu0 }
 0x5bc   :  { %v2063_v22 = vpop.f32.mrb[3].mxu0 }
 0x5c7   :  { %v1516_v23 = vpop.f32.mrb[4].mxu0 }
 0x5c8   :  { %v701_v24 = vmul.f32 0.17677669, %v1516_v23  ;;  %v691_v25 = vpop.f32.mrb[5].mxu0 }
 0x5c9   :  { %v700_v26 = vmul.f32 0.17677669, %v691_v25 }
 0x5ca   :  { %v703_v28 = vsel %vm2018_vm7, %v701_v24, -1e+30 }
 0x5cb   :  { %v707_v29 = vsel %vm295_vm8, %v703_v28, -inf  ;;  %v702_v31 = vsel %vm2022_vm9, %v700_v26, -1e+30 }
 0x5cc   :  { %708 = vmax.xlane.f32.xlu0 %v707_v29  ;;  %v704_v32 = vsel %vm295_vm8, %v702_v31, -inf }
 0x5cd   :  { %705 = vmax.xlane.f32.xlu1 %v704_v32 }
 0x5de   :  { %1689 = vrot.lane.b32.xlu1 %v1991_v44, %s1859_s8 }
 0x5e2   :  { %813 = vrot.lane.b32.xlu1 %v1985_v43, %s1860_s9 }
 0x5e6   :  { %815 = vrot.lane.b32.xlu1 %v1983_v42, %s1860_s9 }
 0x659   :  { %v709_v33 = vpop.xlane.xlu0 %708 }
 0x65a   :  { %v711_v34 = vsub.f32 %v703_v28, %v709_v33  ;;  %v706_v35 = vpop.xlane.xlu1 %705 }
 0x65b   :  { %v710_v36 = vsub.f32 %v702_v31, %v706_v35 }
 0x65c   :  { %v714_v37 = vmul.f32 1.442695, %v711_v34 }
 0x65d   :  { %v712_v38 = vmul.f32 1.442695, %v710_v36 }
 0x65e   :  { %1733 = vpow2.f32 %v714_v37  ;;  %v1690_v39 = vpop.permute.xlu1 %1689 }
 0x65f   :  { %v1692_v40 = vunpack.i.h.bf16 %v1690_v39  ;;  %v1691_v41 = vunpack.i.l.bf16 %v1690_v39  ;;  %1735 = vpow2.f32 %v712_v38 }
 0x661   :  { %v1605_v45 = vpack.c.bf16 %v1692_v40, %v1691_v41 }
 0x662   :  { %v814_v59 = vpop.permute.xlu1 %813 }
 0x663   :  { %1606 = vmatprep.subr.bf16.mxu1 %v1605_v45 }
 0x664   :  { %1608 = vmatpush3.bf16.msra.mxu1 %v1605_v45 }
 0x666   :  { %v816_v60 = vpop.permute.xlu1 %815 }
 0x668   :  { %v1734_v46 = vpop.eup %1733 }
 0x669   :  { %v719_v47 = vsel %vm295_vm8, %v1734_v46, 0.0  ;;  %v1736_v43 = vpop.eup %1735 }
 0x66a   :  { %720 = vadd.xlane.f32.xlu0 %v719_v47  ;;  %v716_v42 = vsel %vm295_vm8, %v1736_v43, 0.0 }
 0x66e   :  { %717 = vadd.xlane.f32.xlu0 %v716_v42 }
 0x684   :  { %1694 = vrot.lane.b32.xlu0 %v1991_v44, %s1861_s10 }
 0x6f7   :  { %v721_v48 = vpop.xlane.xlu0 %720 }
 0x6f8   :  { %1737 = vrcp.f32 %v721_v48 }
 0x6fb   :  { %v718_v49 = vpop.xlane.xlu0 %717 }
 0x6fc   :  { %1739 = vrcp.f32 %v718_v49 }
 0x6ff   :  { %v1695_v50 = vpop.permute.xlu0 %1694 }
 0x700   :  { %v1697_v52 = vunpack.i.h.bf16 %v1695_v50  ;;  %v1696_v53 = vunpack.i.l.bf16 %v1695_v50 }
 0x702   :  { %v1609_v54 = vpack.c.bf16 %v1697_v52, %v1696_v53  ;;  %v1738_v55 = vpop.eup %1737 }
 0x703   :  { %v725_v58 = vmul.f32 %v1738_v55, %v1734_v46 }
 0x704   :  { %1611 = vmatprep.subr.msk.bf16.mxu1 %vm1999_vm2, %v1609_v54 }
 0x706   :  { %v1740_v56 = vpop.eup %1739 }
 0x707   :  { %v724_v57 = vmul.f32 %v1740_v56, %v1736_v43  ;;  %v1050_v56 = vsub.s32 2, %v1970_v27 }
 0x709   :  { %1521 = vmatprep.mubr.msk.f32.mxu1 %vm295_vm8, %v724_v57  ;;  %v1051_v57 = vrot.slane %v1976_v30, %v1050_v56 }
 0x70a   :  { %1522 = vmatmul.mubr.msk.f32.vlgmr.msra.gmra.mrb[6].mxu1 %vm295_vm8, %v725_v58 }
 0x70b   :  { %1614 = vmatpush3.bf16.xpose.msk.msra.mxu1 %vm1999_vm2, %v1609_v54  ;;  %1528 = vmatprep.mubr.msk.f32.mxu1 %vm207_vm1, %v814_v59 }
 0x712   :  { %1529 = vmatmul.mubr.msk.f32.vlgmr.msra.gmra.mrb[8].mxu1 %vm207_vm1, %v816_v60 }
 0x7dd   :  { %v1523_v61 = vpop.f32.mrb[6].mxu1 }
 0x7de   :  { %v804_v63 = vpop.f32.mrb[7].mxu1 }
 0x7e5   :  { %v1530_v2 = vpop.f32.mrb[8].mxu1 }
 0x7e6   :  { %v905_v4 = vmul.f32 0.17677669, %v1530_v2  ;;  %v895_v5 = vpop.f32.mrb[9].mxu1 }
 0x7e7   :  { %v904_v6 = vmul.f32 0.17677669, %v895_v5 }
 0x7e8   :  { %v907_v7 = vsel %vm2018_vm7, %v905_v4, -1e+30 }
 0x7e9   :  { %v911_v8 = vsel %vm295_vm8, %v907_v7, -inf  ;;  %v906_v51 = vsel %vm2022_vm9, %v904_v6, -1e+30 }
 0x7ea   :  { %912 = vmax.xlane.f32.xlu0 %v911_v8  ;;  %v908_v9 = vsel %vm295_vm8, %v906_v51, -inf }
 0x7eb   :  { %909 = vmax.xlane.f32.xlu1 %v908_v9 }
 0x7fc   :  { %1699 = vrot.lane.b32.xlu1 %v1991_v44, %s1862_s11 }
 0x800   :  { %1709 = vrot.lane.b32.xlu1 %v1708_v10, %s1863_s12 }
 0x804   :  { %1019 = vrot.lane.b32.xlu1 %v2063_v22, %s1850_s28 }
 0x808   :  { %1021 = vrot.lane.b32.xlu1 %v2061_v21, %s1850_s28 }
 0x80c   :  { %1029 = vrot.lane.b32.xlu1 %v1523_v61, %s1864_s1 }
 0x877   :  { %v913_v62 = vpop.xlane.xlu0 %912 }
 0x878   :  { %v915_v3 = vsub.f32 %v907_v7, %v913_v62  ;;  %v910_v11 = vpop.xlane.xlu1 %909  ;;  %v1189_v62 = vld [vmem:[#allocation7] sm:$0xff] }
 0x879   :  { %v914_v12 = vsub.f32 %v906_v51, %v910_v11 }
 0x87a   :  { %v918_v13 = vmul.f32 1.442695, %v915_v3  ;;  %v1190_v3 = vld [vmem:[#allocation7 + $0x8] sm:$0xff] }
 0x87b   :  { %v916_v23 = vmul.f32 1.442695, %v914_v12  ;;  %v1627_v11 = vpack.c.bf16 %v1190_v3, %v1189_v62  ;;  %v1191_v12 = vld [vmem:[#allocation7 + $0x10] sm:$0xff] }
 0x87c   :  { %v1700_v44 = vpop.permute.xlu1 %1699 }
 0x87d   :  { %1741 = vpow2.f32 %v916_v23  ;;  %v1702_v24 = vunpack.i.h.bf16 %v1700_v44  ;;  %v1701_v16 = vunpack.i.l.bf16 %v1700_v44  ;;  %1628 = vmatprep.subr.bf16.mxu1 %v1627_v11  ;;  %v1193_v44 = vld [vmem:[#allocation7 + $0x20] sm:$0xff] }
 0x87e   :  { %1743 = vpow2.f32 %v918_v13  ;;  %1630 = vmatpush3.bf16.msra.mxu1 %v1627_v11  ;;  %v1192_v13 = vld [vmem:[#allocation7 + $0x18] sm:$0xff] }
 0x87f   :  { %v1615_v19 = vpack.c.bf16 %v1702_v24, %v1701_v16  ;;  %v1631_v23 = vpack.c.bf16 %v1192_v13, %v1191_v12  ;;  %v1194_v24 = vld [vmem:[#allocation7 + $0x28] sm:$0xff]  ;;  %v1195_v16 = vld [vmem:[#allocation7 + $0x30] sm:$0xff] }
 0x880   :  { %v1710_v35 = vpop.permute.xlu1 %1709 }
 0x881   :  { %1616 = vmatprep.subr.bf16.mxu0 %v1615_v19  ;;  %v1712_v37 = vunpack.i.h.bf16 %v1710_v35  ;;  %v1711_v38 = vunpack.i.l.bf16 %v1710_v35  ;;  %1632 = vmatprep.subr.bf16.mxu1 %v1631_v23 }
 0x882   :  { %1618 = vmatpush3.bf16.msra.mxu0 %v1615_v19  ;;  %1634 = vmatpush3.bf16.msra.mxu1 %v1631_v23  ;;  %v1635_v19 = vpack.c.bf16 %v1194_v24, %v1193_v44 }
 0x883   :  { %v1623_v14 = vpack.c.bf16 %v1712_v37, %v1711_v38 }
 0x884   :  { %v1020_v45 = vpop.permute.xlu1 %1019 }
 0x885   :  { %v1041_v42 = vsel %vm207_vm1, %v2059_v20, %v1020_v45  ;;  %v1199_v45 = vsub.s32 6, %v1970_v27 }
 0x887   :  { %v1742_v22 = vpop.eup %1741 }
 0x888   :  { %v920_v25 = vsel %vm295_vm8, %v1742_v22, 0.0  ;;  %v1744_v21 = vpop.eup %1743  ;;  %v1022_v46 = vpop.permute.xlu1 %1021 }
 0x889   :  { %921 = vadd.xlane.f32.xlu0 %v920_v25  ;;  %v923_v26 = vsel %vm295_vm8, %v1744_v21, 0.0  ;;  %v1042_v49 = vsel %vm207_vm1, %v2057_v18, %v1022_v46  ;;  %v1200_v46 = vrot.slane %v1976_v30, %v1199_v45 }
 0x88c   :  { %v1030_v47 = vpop.permute.xlu1 %1029 }
 0x88d   :  { %924 = vadd.xlane.f32.xlu0 %v923_v26  ;;  %v1044_v53 = vsel %vm295_vm8, %v1042_v49, %v1030_v47 }
 0x8a3   :  { %1704 = vrot.lane.b32.xlu0 %v1703_v17, %s1863_s12 }
 0x8a7   :  { %1027 = vrot.lane.b32.xlu0 %v804_v63, %s1864_s1 }
 0x916   :  { %v922_v28 = vpop.xlane.xlu0 %921 }
 0x917   :  { %1745 = vrcp.f32 %v922_v28 }
 0x91a   :  { %v925_v29 = vpop.xlane.xlu0 %924 }
 0x91b   :  { %1747 = vrcp.f32 %v925_v29 }
 0x91e   :  { %v1705_v31 = vpop.permute.xlu0 %1704 }
 0x91f   :  { %v1707_v32 = vunpack.i.h.bf16 %v1705_v31  ;;  %v1706_v33 = vunpack.i.l.bf16 %v1705_v31 }
 0x921   :  { %v1746_v34 = vpop.eup %1745  ;;  %v1619_v36 = vpack.c.bf16 %v1707_v32, %v1706_v33  ;;  %v1179_v33 = vsub.s32 3, %v1970_v27 }
 0x922   :  { %v928_v39 = vmul.f32 %v1746_v34, %v1742_v22  ;;  %v1028_v43 = vpop.permute.xlu0 %1027  ;;  %v1196_v22 = vld [vmem:[#allocation7 + $0x38] sm:$0xff]  ;;  %v1185_v34 = vsub.s32 4, %v1970_v27 }
 0x923   :  { %1620 = vmatprep.subr.bf16.mxu0 %v1619_v36  ;;  %v1043_v50 = vsel %vm295_vm8, %v1041_v42, %v1028_v43  ;;  %v1639_v25 = vpack.c.bf16 %v1196_v22, %v1195_v16  ;;  %v1180_v35 = vrot.slane %v1976_v30, %v1179_v33 }
 0x924   :  { %1535 = vmatprep.mubr.msk.f32.mxu0 %vm295_vm8, %v928_v39  ;;  %v1186_v38 = vrot.slane %v1976_v30, %v1185_v34 }
 0x925   :  { %v1748_v40 = vpop.eup %1747 }
 0x926   :  { %v929_v15 = vmul.f32 %v1748_v40, %v1744_v21 }
 0x928   :  { %1536 = vmatmul.mubr.msk.f32.vlgmr.msra.gmra.mrb[6].mxu0 %vm295_vm8, %v929_v15 }
 0x929   :  { %1622 = vmatpush3.bf16.msra.mxu0 %v1619_v36 }
 0x92a   :  { %1624 = vmatprep.subr.bf16.mxu0 %v1623_v14 }
 0x92d   :  { %1626 = vmatpush3.bf16.msra.mxu0 %v1623_v14 }
 0x92e   :  { %1636 = vmatprep.subr.bf16.mxu0 %v1635_v19 }
 0x9fb   :  { %v1537_v17 = vpop.f32.mrb[6].mxu0 }
 0x9fc   :  { %1037 = vrot.lane.b32.xlu1 %v1537_v17, %s1865_s13  ;;  %v1008_v41 = vpop.f32.mrb[7].mxu0 }
 0x9fd   :  { %1035 = vrot.lane.b32.xlu0 %v1008_v41, %s1865_s13 }
 0xa6e   :  { %v1038_v48 = vpop.permute.xlu1 %1037 }
 0xa6f   :  { %v1036_v52 = vpop.permute.xlu0 %1035  ;;  %v1047_v55 = vsel %vm1045_vm10, %v1044_v53, %v1038_v48 }
 0xa70   :  { %v1046_v54 = vsel %vm1045_vm10, %v1043_v50, %v1036_v52  ;;  %v1286_v52 = vsub.s32 5, %v1970_v27 }
 0xa71   :  { %1546 = vmatprep.mubr.msk.f32.mxu0 %vm62_vm0, %v1046_v54 }
 0xa72   :  { %1547 = vmatmul.mubr.msk.f32.vlgmr.msra.gmra.mrb[8].mxu0 %vm62_vm0, %v1047_v55  ;;  %v1287_v53 = vrot.slane %v1976_v30, %v1286_v52 }
 0xa73   :  { %1638 = vmatpush3.bf16.xpose.msra.mxu0 %v1635_v19 }
 0xa74   :  { %1640 = vmatprep.subr.bf16.mxu0 %v1639_v25 }
 0xa7b   :  { %1642 = vmatpush3.bf16.xpose.msra.mxu0 %v1639_v25 }
 0xb45   :  { %v1548_v20 = vpop.f32.mrb[8].mxu0 }
 0xb46   :  { %v1146_v58 = vadd.f32 %v1548_v20, %v1051_v57  ;;  %v1140_v59 = vpop.f32.mrb[9].mxu0 }
 0xb47   :  { %v1141_v60 = vadd.f32 %v1140_v59, %v1051_v57 }
 0xb48   :  { %v2116_v18 = vadd.f32 %v1146_v58, %v1946_v1 }
 0xb49   :  { %v2119_v61 = vadd.f32 %v1141_v60, %v1944_v0 }
 0xb4a   :  { %v1154_v63 = vsel %vm62_vm0, %v2116_v18, 0.0 }
 0xb4b   :  { %1155 = vadd.xlane.f32.xlu1 %v1154_v63  ;;  %v1151_v2 = vsel %vm62_vm0, %v2119_v61, 0.0 }
 0xb4c   :  { %1152 = vadd.xlane.f32.xlu0 %v1151_v2 }
 0xbd8   :  { %v1156_v4 = vpop.xlane.xlu1 %1155 }
 0xbd9   :  { %v1158_v5 = vmul.f32 0.03125, %v1156_v4  ;;  %v1153_v6 = vpop.xlane.xlu0 %1152 }
 0xbda   :  { %v1157_v7 = vmul.f32 0.03125, %v1153_v6 }
 0xbdb   :  { %v1160_v8 = vsub.f32 %v2116_v18, %v1158_v5 }
 0xbdc   :  { %v1159_v1 = vsub.f32 %v2119_v61, %v1157_v7 }
 0xbdd   :  { %v1162_v9 = vmul.f32 %v1160_v8, %v1160_v8 }
 0xbde   :  { %v1161_v51 = vmul.f32 %v1159_v1, %v1159_v1 }
 0xbdf   :  { %v1166_v10 = vsel %vm62_vm0, %v1162_v9, 0.0 }
 0xbe0   :  { %v1163_v0 = vsel %vm62_vm0, %v1161_v51, 0.0 }
 0xbe1   :  { %1164 = vadd.xlane.f32.xlu0 %v1163_v0 }
 0xbe5   :  { %1167 = vadd.xlane.f32.xlu0 %v1166_v10 }
 0xc6e   :  { %v1165_v21 = vpop.xlane.xlu0 %1164 }
 0xc6f   :  { %v1169_v26 = vmul.f32 0.03125, %v1165_v21 }
 0xc71   :  { %v1171_v28 = vadd.f32 1e-05, %v1169_v26 }
 0xc72   :  { %v1168_v29 = vpop.xlane.xlu0 %1167 }
 0xc73   :  { %1749 = vrsqrt.f32 %v1171_v28  ;;  %v1170_v31 = vmul.f32 0.03125, %v1168_v29 }
 0xc75   :  { %v1172_v32 = vadd.f32 1e-05, %v1170_v31 }
 0xc77   :  { %1751 = vrsqrt.f32 %v1172_v32 }
 0xc7d   :  { %v1750_v36 = vpop.eup %1749 }
 0xc7e   :  { %v1175_v37 = vmul.f32 %v1750_v36, %v1159_v1 }
 0xc80   :  { %v1181_v39 = vmul.f32 %v1180_v35, %v1175_v37 }
 0xc81   :  { %v1752_v40 = vpop.eup %1751 }
 0xc82   :  { %v1176_v14 = vmul.f32 %v1752_v40, %v1160_v8  ;;  %v1187_v15 = vadd.f32 %v1186_v38, %v1181_v39 }
 0xc84   :  { %v1182_v17 = vmul.f32 %v1180_v35, %v1176_v14  ;;  %1557 = vmatprep.mubr.msk.f32.mxu1 %vm62_vm0, %v1187_v15 }
 0xc86   :  { %v1188_v41 = vadd.f32 %v1186_v38, %v1182_v17 }
 0xc88   :  { %1558 = vmatmul.mubr.msk.f32.vlgmr.msra.gmra.mrb[10].mxu1 %vm62_vm0, %v1188_v41 }
 0xd5b   :  { %v1559_v47 = vpop.f32.mrb[10].mxu1 }
 0xd5c   :  { %v1279_v43 = vadd.f32 %v1559_v47, %v1200_v46  ;;  %v1273_v42 = vpop.f32.mrb[11].mxu1 }
 0xd5d   :  { %v1274_v48 = vadd.f32 %v1273_v42, %v1200_v46 }
 0xd5e   :  { %v1283_v50 = vmax.f32 %v1279_v43, 0.0 }
 0xd5f   :  { %v1282_v49 = vmax.f32 %v1274_v48, 0.0 }
 0xd61   :  { %1568 = vmatprep.mubr.f32.mxu0 %v1282_v49 }
 0xd62   :  { %1569 = vmatmul.mubr.f32.vlgmr.msra.gmra.mrb[10].mxu0 %v1283_v50 }
 0xe35   :  { %v1570_v54 = vpop.f32.mrb[10].mxu0 }
 0xe36   :  { %v1360_v55 = vadd.f32 %v1570_v54, %v1287_v53  ;;  %v1354_v56 = vpop.f32.mrb[11].mxu0 }
 0xe37   :  { %v1355_v57 = vadd.f32 %v1354_v56, %v1287_v53 }
 0xe38   :  { %v1364_v20 = vadd.f32 %v1360_v55, %v2116_v18 }
 0xe39   :  { %v1363_v58 = vadd.f32 %v1355_v57, %v2119_v61 }
 0xe3a   :  { %1366 = vst.msk [vmem:[#allocation8 + $0x8] sm:$0xff] %vm62_vm0, %v1364_v20 }
 0xe3b   :  { %1365 = vst.msk [vmem:[#allocation8] sm:$0xff] %vm62_vm0, %v1363_v58 }
 0xe3c   :  { %1830 = shalt.err (!%p1827_p0)
}
 0xe3d   :  { %s1831_s20 = scalar_lea.hbm %s2162_s4, 256 }
 0xe3e   :  { %p1832_p1 = scmp.ne.s32.totalorder %s2162_s4, %s1831_s20  ;;  %p1835_p2 = scmp.lt.u32.totalorder %s1831_s20, %s2162_s4 }
 0xe40   :  { %p1837_p3 = pnand %p1835_p2, %p1832_p1 }
 0xe42   :  { %1840 = shalt.err (!%p1837_p3)
}
 0xe43   :  { %1378 = dma.vmem_to_hbm [thread:$0]  %s1373_s15, 256, %s2162_s4, [#allocation4], %s1849_s27, %s1849_s27, %s1850_s28  }
 0xe44   :  { %1845 = dma.done.wait [#allocation4], 256  }
 0xe45   :  { %1846 = vsyncadd [#allocation4], 4294967040 }
 0xe46   :  { %1382 = vsyncpa [#allocation3], 1 }
 0xe47   :  { %1383 = vsyncpa [#allocation6], 1 }
 0xe48   :  { %1384 = vsyncpa [#allocation4], 1 }

</bundles_post_ra>
